<compile_context>
chip_gen: v6e
topology: v6e:2x2x1
jax: 0.10.0
libtpu: 0.0.40
codegen_flags: <defaults>
</compile_context>

<pallas_src>
import jax
import jax.numpy as jnp
from jax.experimental import pallas as pl
from jax.experimental.pallas import tpu as pltpu

_LANES = 128
_SUBLANES = 8


def _dis_partial_kernel(p_ref, t_ref, out_ref):
    # p_ref / t_ref: (3, tr, 128) coordinate-plane stacks in their original dtype.
    dx = p_ref[0].astype(jnp.float32) - t_ref[0].astype(jnp.float32)
    dy = p_ref[1].astype(jnp.float32) - t_ref[1].astype(jnp.float32)
    dz = p_ref[2].astype(jnp.float32) - t_ref[2].astype(jnp.float32)
    dist = jnp.sqrt(dx * dx + dy * dy + dz * dz)            # (tr, 128), EUP sqrt
    tr = dist.shape[0]
    # Whole-vreg partial reduction: (tr,128) -> (tr//8, 8, 128), sum over axis 0.
    # Rows {k, k+8, k+16, ...} live in the same sublane of successive vregs, so this is
    # pure VPU vreg adds (no XLU) and the store below is an unmasked (8,128) store.
    out_ref[0, :, :] = jnp.sum(dist.reshape(tr // _SUBLANES, _SUBLANES, _LANES), axis=0)


def get_dis_loss(pred, target, *, row_tile=512):
    """pred: (B, 21, 3); target: (B, 63). Returns scalar f32 mean per-joint distance."""
    B, J, C = pred.shape
    assert C == 3 and target.shape == (B, J * C)
    N = B * J                                      # true joint count (divisor)

    # ---- tile / grid selection (adaptive, minimal padding, grid >= 2 when possible) ----
    n_rows = pl.cdiv(N, _LANES)                    # vreg-rows of 128 joints
    rows8 = _SUBLANES * pl.cdiv(n_rows, _SUBLANES) # round to sublane multiple
    if rows8 <= _SUBLANES:
        tr = rows8                                 # single tiny tile
    else:
        g = max(2, pl.cdiv(rows8, row_tile))       # target #steps (>=2 -> both v7x TCs)
        tr = _SUBLANES * pl.cdiv(pl.cdiv(rows8, g), _SUBLANES)
    grid = pl.cdiv(rows8, tr)
    rows_p = grid * tr
    n_pad = rows_p * _LANES                        # padded joint count

    # ---- one transpose + pad + reshape per tensor: (N,3) -> (3, rows_p, 128) ----
    def planes(a3):
        v = jnp.transpose(a3.reshape(N, 3), (1, 0))          # (3, N), dtype preserved
        v = jnp.pad(v, ((0, 0), (0, n_pad - N)))              # padded joints -> dist 0
        return v.reshape(3, rows_p, _LANES)

    p_planes = planes(pred)
    t_planes = planes(target)

    itemsize = max(jnp.dtype(pred.dtype).itemsize, jnp.dtype(target.dtype).itemsize)
    cost = pl.CostEstimate(
        flops=9 * n_pad,                           # 3 sub + 3 mul + 2 add + partial-sum add
        transcendentals=n_pad,                     # sqrt
        bytes_accessed=2 * 3 * n_pad * itemsize + grid * _SUBLANES * _LANES * 4,
    )

    in_spec = pl.BlockSpec((3, tr, _LANES), lambda i: (0, i, 0))
    partials = pl.pallas_call(
        _dis_partial_kernel,
        out_shape=jax.ShapeDtypeStruct((grid, _SUBLANES, _LANES), jnp.float32),
        grid=(grid,),
        in_specs=[in_spec, in_spec],
        out_specs=pl.BlockSpec((1, _SUBLANES, _LANES), lambda i: (i, 0, 0)),
        compiler_params=pltpu.CompilerParams(
            dimension_semantics=("parallel",),     # independent steps -> shard across TCs
        ),
        cost_estimate=cost,
    )(p_planes, t_planes)

    # Tiny final reduce; divide by the TRUE joint count (padding contributes exactly 0).
    return jnp.sum(partials) / jnp.float32(N)


if __name__ == "__main__":
    key = jax.random.PRNGKey(0)
    k1, k2 = jax.random.split(key)
    B = 2
    pred = jax.random.normal(k1, (B, 21, 3), dtype=jnp.float32)
    target = jax.random.normal(k2, (B, 63), dtype=jnp.float32)

    loss = get_dis_loss(pred, target)
    jax.block_until_ready(loss)

    # Reference: mean over B*21 joints of the paired (diagonal) Euclidean distance.
    # (mean-of-means == global mean since every hand has exactly 21 joints.)
    ref = jnp.mean(jnp.sqrt(jnp.sum((pred - target.reshape(B, 21, 3)) ** 2, axis=-1)))
    assert jnp.allclose(loss, ref, rtol=1e-6, atol=1e-6), (loss, ref)

    print("KERNEL_OK")
</pallas_src>

<mosaic_0001>
module attributes {stable_mosaic.version = 11 : i64} {
  func.func @_dis_partial_kernel(%arg0: i32, %arg1: memref<3x8x128xf32, #tpu.memory_space<vmem>>, %arg2: memref<3x8x128xf32, #tpu.memory_space<vmem>>, %arg3: memref<1x8x128xf32, #tpu.memory_space<vmem>>) attributes {dimension_semantics = [#tpu.dimension_semantics<parallel>], iteration_bounds = array<i64: 1>, scalar_prefetch = 0 : i64, scratch_operands = 0 : i64, tpu.core_type = #tpu.core_type<tc>, window_params = [{transform_indices = @transform_0, window_bounds = array<i64: 3, 8, 128>}, {transform_indices = @transform_1, window_bounds = array<i64: 3, 8, 128>}, {transform_indices = @transform_2, window_bounds = array<i64: 1, 8, 128>}]} {
    %c0 = arith.constant 0 : index
    %c0_0 = arith.constant 0 : index
    %c0_1 = arith.constant 0 : index
    %0 = vector.load %arg1[%c0, %c0_0, %c0_1] : memref<3x8x128xf32, #tpu.memory_space<vmem>>, vector<1x8x128xf32>
    %1 = vector.shape_cast %0 : vector<1x8x128xf32> to vector<8x128xf32>
    %c0_2 = arith.constant 0 : index
    %c0_3 = arith.constant 0 : index
    %c0_4 = arith.constant 0 : index
    %2 = vector.load %arg2[%c0_2, %c0_3, %c0_4] : memref<3x8x128xf32, #tpu.memory_space<vmem>>, vector<1x8x128xf32>
    %3 = vector.shape_cast %2 : vector<1x8x128xf32> to vector<8x128xf32>
    %4 = arith.subf %1, %3 : vector<8x128xf32>
    %c1 = arith.constant 1 : index
    %c0_5 = arith.constant 0 : index
    %c0_6 = arith.constant 0 : index
    %5 = vector.load %arg1[%c1, %c0_5, %c0_6] : memref<3x8x128xf32, #tpu.memory_space<vmem>>, vector<1x8x128xf32>
    %6 = vector.shape_cast %5 : vector<1x8x128xf32> to vector<8x128xf32>
    %c1_7 = arith.constant 1 : index
    %c0_8 = arith.constant 0 : index
    %c0_9 = arith.constant 0 : index
    %7 = vector.load %arg2[%c1_7, %c0_8, %c0_9] : memref<3x8x128xf32, #tpu.memory_space<vmem>>, vector<1x8x128xf32>
    %8 = vector.shape_cast %7 : vector<1x8x128xf32> to vector<8x128xf32>
    %9 = arith.subf %6, %8 : vector<8x128xf32>
    %c2 = arith.constant 2 : index
    %c0_10 = arith.constant 0 : index
    %c0_11 = arith.constant 0 : index
    %10 = vector.load %arg1[%c2, %c0_10, %c0_11] : memref<3x8x128xf32, #tpu.memory_space<vmem>>, vector<1x8x128xf32>
    %11 = vector.shape_cast %10 : vector<1x8x128xf32> to vector<8x128xf32>
    %c2_12 = arith.constant 2 : index
    %c0_13 = arith.constant 0 : index
    %c0_14 = arith.constant 0 : index
    %12 = vector.load %arg2[%c2_12, %c0_13, %c0_14] : memref<3x8x128xf32, #tpu.memory_space<vmem>>, vector<1x8x128xf32>
    %13 = vector.shape_cast %12 : vector<1x8x128xf32> to vector<8x128xf32>
    %14 = arith.subf %11, %13 : vector<8x128xf32>
    %15 = arith.mulf %4, %4 : vector<8x128xf32>
    %16 = arith.mulf %9, %9 : vector<8x128xf32>
    %17 = arith.addf %15, %16 : vector<8x128xf32>
    %18 = arith.mulf %14, %14 : vector<8x128xf32>
    %19 = arith.addf %17, %18 : vector<8x128xf32>
    %20 = math.sqrt %19 : vector<8x128xf32>
    %21 = vector.shape_cast %20 : vector<8x128xf32> to vector<1x8x128xf32>
    %cst = arith.constant dense<0.000000e+00> : vector<8x128xf32>
    %22 = vector.multi_reduction <add>, %21, %cst [0] : vector<1x8x128xf32> to vector<8x128xf32>
    %c0_15 = arith.constant 0 : index
    %c0_16 = arith.constant 0 : index
    %c0_17 = arith.constant 0 : index
    %23 = vector.load %arg3[%c0_15, %c0_16, %c0_17] : memref<1x8x128xf32, #tpu.memory_space<vmem>>, vector<1x8x128xf32>
    %24 = vector.shape_cast %23 : vector<1x8x128xf32> to vector<8x128xf32>
    %25 = vector.shape_cast %22 : vector<8x128xf32> to vector<1x8x128xf32>
    tpu.vector_store %arg3[%c0_15, %c0_16, %c0_17], %25 {strides = array<i32>} : memref<1x8x128xf32, #tpu.memory_space<vmem>>, vector<1x8x128xf32>,
    return
  }
  func.func @transform_0(%arg0: i32) -> (i32, i32, i32) {
    %c0_i32 = arith.constant 0 : i32
    %c0_i32_0 = arith.constant 0 : i32
    %c0_i32_1 = arith.constant 0 : i32
    return %c0_i32, %arg0, %c0_i32_0 : i32, i32, i32
  }
  func.func @transform_1(%arg0: i32) -> (i32, i32, i32) {
    %c0_i32 = arith.constant 0 : i32
    %c0_i32_0 = arith.constant 0 : i32
    %c0_i32_1 = arith.constant 0 : i32
    return %c0_i32, %arg0, %c0_i32_0 : i32, i32, i32
  }
  func.func @transform_2(%arg0: i32) -> (i32, i32, i32) {
    %c0_i32 = arith.constant 0 : i32
    %c0_i32_0 = arith.constant 0 : i32
    %c0_i32_1 = arith.constant 0 : i32
    return %arg0, %c0_i32, %c0_i32_0 : i32, i32, i32
  }
}

</mosaic_0001>

<bundles_post_ra>
// kernel: tpu_custom_call.1
= control target key start
LH: loop header
LB: loop body
LE: loop exit
PB: predicated region body
PF: predicated region fallthrough
CT: control target
= control target key end

     0   :  { %7 = vsyncpa [#allocation3], 0  ;;  %s185_s0 = inlined_call_operand.hbm [shape: f32[3,8,128], index: 0, kind: input, shape index: {}]   ;;  %s186_s1 = inlined_call_operand.hbm [shape: f32[3,8,128], index: 1, kind: input, shape index: {}]   ;;  %s187_s2 = inlined_call_operand.hbm [shape: f32[1,8,128], index: 2, kind: output, shape index: {}]  }
   0x1   :  { %8 = vsyncpa [#allocation6], 0 }
   0x2   :  { %9 = vsyncpa [#allocation4], 0  ;;  %s156_s9 = smov [#allocation2]  }
   0x3   :  { %s15_s10 = sshll.u32 %s156_s9, 4  ;;  %s16_s10 = int_to_ptr.vmem [resolvable:$true] %s15_s10 }
   0x4   :  { %s98_s11 = scalar_lea.vmem %s16_s10, 384  ;;  %p103_p1 = scmp.lt.s32.totalorder %s16_s10, %s16_s10 }
   0x5   :  { %p99_p0 = scmp.ne.s32.totalorder %s16_s10, %s98_s11  ;;  %p104_p2 = scmp.lt.s32.totalorder %s98_s11, %s98_s11 }
   0x7   :  { %p105_p3 = por %p104_p2, %p103_p1 }
   0x9   :  { %p106_p4 = pnand %p105_p3, %p99_p0 }
   0xb   :  { %109 = shalt.err (!%p106_p4)
}
   0xc   :  { %s157_s12 = smov 128   ;;  %s158_s13 = smov 8  }
   0xd   :  { %21 = dma.hbm_to_vmem [thread:$0]  %s185_s0, 384, %s16_s10, [#allocation3], %s157_s12, %s157_s12, %s158_s13  }
   0xe   :  { %s159_s16 = smov [#allocation5]  }
   0xf   :  { %s27_s17 = sshll.u32 %s159_s16, 4  ;;  %s28_s17 = int_to_ptr.vmem [resolvable:$true] %s27_s17 }
  0x10   :  { %s118_s18 = scalar_lea.vmem %s28_s17, 384  ;;  %p123_p6 = scmp.lt.s32.totalorder %s28_s17, %s28_s17 }
  0x11   :  { %p119_p5 = scmp.ne.s32.totalorder %s28_s17, %s118_s18  ;;  %p124_p7 = scmp.lt.s32.totalorder %s118_s18, %s118_s18 }
  0x13   :  { %p125_p8 = por %p124_p7, %p123_p6 }
  0x15   :  { %p126_p9 = pnand %p125_p8, %p119_p5 }
  0x17   :  { %129 = shalt.err (!%p126_p9)
}
  0x18   :  { %33 = dma.hbm_to_vmem [thread:$0]  %s186_s1, 384, %s28_s17, [#allocation6], %s157_s12, %s157_s12, %s158_s13  }
  0x19   :  { %150 = dma.done.wait [#allocation3], 384  }
  0x1a   :  { %151 = vsyncadd [#allocation3], 4294966912 }
  0x1b   :  { %152 = dma.done.wait [#allocation6], 384  }
  0x1c   :  { %153 = vsyncadd [#allocation6], 4294966912  ;;  %v40_v0 = vld [vmem:[#allocation2] sm:$0xff]  ;;  %v41_v1 = vld [vmem:[#allocation5] sm:$0xff]  ;;  %s160_s0 = smov [#allocation7]  }
  0x1d   :  { %v44_v2 = vld [vmem:[#allocation2 + $0x8] sm:$0xff]  ;;  %v42_v3 = vsub.f32 %v40_v0, %v41_v1  ;;  %v46_v4 = vld [vmem:[#allocation5 + $0x8] sm:$0xff]  ;;  %v49_v5 = vld [vmem:[#allocation2 + $0x10] sm:$0xff]  ;;  %s73_s1 = sshll.u32 %s160_s0, 4  ;;  %s74_s1 = int_to_ptr.vmem [resolvable:$true] %s73_s1 }
  0x1e   :  { %v51_v6 = vld [vmem:[#allocation5 + $0x10] sm:$0xff]  ;;  %v47_v7 = vsub.f32 %v44_v2, %v46_v4  ;;  %s130_s21 = scalar_lea.vmem %s74_s1, 128  ;;  %p135_p11 = scmp.lt.s32.totalorder %s74_s1, %s74_s1 }
  0x1f   :  { %v52_v8 = vsub.f32 %v49_v5, %v51_v6  ;;  %v53_v9 = vmul.f32 %v42_v3, %v42_v3  ;;  %p131_p10 = scmp.ne.s32.totalorder %s74_s1, %s130_s21  ;;  %p136_p12 = scmp.lt.s32.totalorder %s130_s21, %s130_s21 }
  0x20   :  { %v54_v10 = vmul.f32 %v47_v7, %v47_v7 }
  0x21   :  { %v56_v11 = vmul.f32 %v52_v8, %v52_v8  ;;  %p137_p13 = por %p136_p12, %p135_p11 }
  0x22   :  { %v55_v12 = vadd.f32 %v54_v10, %v53_v9 }
  0x23   :  { %p138_p0 = pnand %p137_p13, %p131_p10 }
  0x24   :  { %v57_v13 = vadd.f32 %v56_v11, %v55_v12 }
  0x26   :  { %88 = vrsqrt.f32 %v57_v13  ;;  %vm60_vm0 = vcmp.eq.f32.partialorder %v57_v13, inf  ;;  %v63_v15 = vand.u32 2147483648, %v57_v13  ;;  %vm62_vm1 = vcmp.eq.f32.partialorder %v57_v13, 0.0 }
  0x33   :  { %v89_v14 = vpop.eup %88 }
  0x34   :  { %v59_v16 = vmul.f32 %v89_v14, %v57_v13 }
  0x36   :  { %v61_v17 = vsel %vm60_vm0, %v57_v13, %v59_v16 }
  0x37   :  { %v64_v18 = vsel %vm62_vm1, %v63_v15, %v61_v17 }
  0x38   :  { %66 = vst [vmem:[#allocation7] sm:$0xff] %v64_v18 }
  0x39   :  { %141 = shalt.err (!%p138_p0)
}
  0x3a   :  { %76 = dma.vmem_to_hbm [thread:$0]  %s74_s1, 128, %s187_s2, [#allocation4]  }
  0x3b   :  { %154 = dma.done.wait [#allocation4], 128  }
  0x3c   :  { %155 = vsyncadd [#allocation4], 4294967168 }
  0x3d   :  { %80 = vsyncpa [#allocation3], 1 }
  0x3e   :  { %81 = vsyncpa [#allocation6], 1 }
  0x3f   :  { %82 = vsyncpa [#allocation4], 1 }

</bundles_post_ra>
